<compile_context>
chip_gen: v5e
topology: v5e:2x2
jax: 0.10.0
libtpu: 0.0.40
codegen_flags: <defaults>
</compile_context>

<pallas_src>
import jax
import jax.numpy as jnp
from jax.experimental import pallas as pl
from jax.experimental.pallas import tpu as pltpu


def _round_up(x: int, m: int) -> int:
    return ((x + m - 1) // m) * m


def mlp_kernel(x_ref, w1_ref, b1_ref, w2_ref, b2_ref, o_ref):
    # x:(TB,F)  w1:(F,H)  b1:(1,H) f32  w2:(H,O)  b2:(1,O) f32  o:(TB,O)
    x = x_ref[...]
    w1 = w1_ref[...]
    n_feature = x.shape[1]

    # ---- Layer 1 on the VPU: K (= n_feature) is tiny, so the MXU systolic
    # array would be almost entirely padding.  Statically unrolled broadcast
    # FMAs (run in compute_dtype; epilogue below is f32).
    h = x[:, 0:1] * w1[0:1, :]
    for k in range(1, n_feature):          # static unroll (n_feature is tiny)
        h = h + x[:, k:k + 1] * w1[k:k + 1, :]
    h = jnp.maximum(h + b1_ref[...], 0.0)  # bias add + ReLU in f32 (b1 is f32)

    # ---- Layer 2 on the MXU with f32 accumulation.  Output block keeps the
    # true n_output width (no 128-lane padding of the output).
    o = jnp.dot(h.astype(w2_ref.dtype), w2_ref[...],
                preferred_element_type=jnp.float32)
    o_ref[...] = (o + b2_ref[...]).astype(o_ref.dtype)


def net_forward(x, w1, b1, w2, b2, *, block_batch=32768,
                compute_dtype=jnp.float32):
    """Forward pass of Net: relu(x @ w1 + b1) @ w2 + b2.

    x:(N,F), w1:(F,H), b1:(1,H), w2:(H,O), b2:(1,O).
    compute_dtype: keep f32 on v5e (no bf16 VALU); use jnp.bfloat16 on
    v6e/v7x to halve input/weight HBM traffic.  Bias add / ReLU and the
    layer-2 accumulation stay in f32 either way.
    """
    n, n_feature = x.shape
    n_hidden = w1.shape[1]
    n_output = w2.shape[1]
    out_dtype = x.dtype

    # Batch tile: as large as allowed (the kernel is HBM / step-overhead
    # bound and the weights are resident, so bigger tiles only grow the tiny
    # x/out double buffers).  Always a multiple of the sublane packing
    # (8 for f32, 16 for bf16) regardless of the caller's block_batch, and
    # capped so the grid keeps >= 2 steps for v7x's two TensorCores.
    mult = 16 if jnp.dtype(compute_dtype) == jnp.dtype(jnp.bfloat16) else 8
    tb = _round_up(max(1, min(block_batch, n)), mult)
    if n > 2 * mult:
        tb = min(tb, _round_up(pl.cdiv(n, 2), mult))
    grid = (pl.cdiv(n, tb),)

    # Cast inputs to the compute dtype; biases stay f32 for the f32 epilogue.
    x = x.astype(compute_dtype)
    w1 = w1.astype(compute_dtype)
    w2 = w2.astype(compute_dtype)
    b1 = b1.astype(jnp.float32).reshape(1, n_hidden)
    b2 = b2.astype(jnp.float32).reshape(1, n_output)

    itemsize = jnp.dtype(compute_dtype).itemsize
    flops = 2 * n * (n_feature * n_hidden + n_hidden * n_output)
    bytes_accessed = (
        n * n_feature * itemsize                         # x
        + n_feature * n_hidden * itemsize                # W1
        + n_hidden * 4                                   # b1 (f32)
        + n_hidden * n_output * itemsize                 # W2
        + n_output * 4                                   # b2 (f32)
        + n * n_output * jnp.dtype(out_dtype).itemsize   # out (unpadded)
    )

    return pl.pallas_call(
        mlp_kernel,
        out_shape=jax.ShapeDtypeStruct((n, n_output), out_dtype),
        grid=grid,
        in_specs=[
            pl.BlockSpec((tb, n_feature), lambda i: (i, 0)),        # x tile
            pl.BlockSpec((n_feature, n_hidden), lambda i: (0, 0)),  # W1 resident
            pl.BlockSpec((1, n_hidden), lambda i: (0, 0)),          # b1 resident
            pl.BlockSpec((n_hidden, n_output), lambda i: (0, 0)),   # W2 resident
            pl.BlockSpec((1, n_output), lambda i: (0, 0)),          # b2 resident
        ],
        out_specs=pl.BlockSpec((tb, n_output), lambda i: (i, 0)),
        compiler_params=pltpu.CompilerParams(
            dimension_semantics=("parallel",),      # megacore on v7x; harmless elsewhere
            vmem_limit_bytes=32 * 1024 * 1024,      # safe on v7x's 64 MiB VMEM
        ),
        cost_estimate=pl.CostEstimate(
            flops=flops, transcendentals=0, bytes_accessed=bytes_accessed),
    )(x, w1, b1, w2, b2)


def init_linear_params(key, fan_in, fan_out):
    # Deterministic init mimicking torch.nn.Linear default:
    # U[-1/sqrt(fan_in), 1/sqrt(fan_in)].
    k_w, k_b = jax.random.split(key)
    bound = 1.0 / jnp.sqrt(fan_in)
    w = jax.random.uniform(k_w, (fan_in, fan_out), jnp.float32, -bound, bound)
    b = jax.random.uniform(k_b, (1, fan_out), jnp.float32, -bound, bound)
    return w, b


if __name__ == "__main__":
    n_feature, n_hidden, n_output = 2, 32, 2
    batch = 16

    key = jax.random.PRNGKey(0)
    k_x, k_l1, k_l2 = jax.random.split(key, 3)

    # Input data analogous to the two Gaussian clusters in the original script.
    x = jax.random.normal(k_x, (batch, n_feature), jnp.float32)
    x = x.at[: batch // 2].add(2.0).at[batch // 2:].add(-2.0)

    w1, b1 = init_linear_params(k_l1, n_feature, n_hidden)
    w2, b2 = init_linear_params(k_l2, n_hidden, n_output)

    # Small tile so the demo exercises the multi-step batch grid (grid=(2,)).
    out = net_forward(x, w1, b1, w2, b2, block_batch=8)
    out = jax.block_until_ready(out)

    # Reference check in plain JAX.
    ref = jnp.maximum(x @ w1 + b1, 0.0) @ w2 + b2
    assert out.shape == (batch, n_output)
    assert jnp.allclose(out, ref, atol=1e-5, rtol=1e-5)

    print("KERNEL_OK")
</pallas_src>

<mosaic_0001>
module attributes {stable_mosaic.version = 11 : i64} {
  func.func @mlp_kernel(%arg0: i32, %arg1: memref<8x2xf32, #tpu.memory_space<vmem>>, %arg2: memref<2x32xf32, #tpu.memory_space<vmem>>, %arg3: memref<1x32xf32, #tpu.memory_space<vmem>>, %arg4: memref<32x2xf32, #tpu.memory_space<vmem>>, %arg5: memref<1x2xf32, #tpu.memory_space<vmem>>, %arg6: memref<8x2xf32, #tpu.memory_space<vmem>>) attributes {dimension_semantics = [#tpu.dimension_semantics<parallel>], iteration_bounds = array<i64: 2>, scalar_prefetch = 0 : i64, scratch_operands = 0 : i64, tpu.core_type = #tpu.core_type<tc>, window_params = [{transform_indices = @transform_0, window_bounds = array<i64: 8, 2>}, {pipeline_mode = #tpu.pipeline_mode<synchronous>, transform_indices = @transform_1, window_bounds = array<i64: 2, 32>}, {pipeline_mode = #tpu.pipeline_mode<synchronous>, transform_indices = @transform_2, window_bounds = array<i64: 1, 32>}, {pipeline_mode = #tpu.pipeline_mode<synchronous>, transform_indices = @transform_3, window_bounds = array<i64: 32, 2>}, {pipeline_mode = #tpu.pipeline_mode<synchronous>, transform_indices = @transform_4, window_bounds = array<i64: 1, 2>}, {transform_indices = @transform_5, window_bounds = array<i64: 8, 2>}]} {
    %c0 = arith.constant 0 : index
    %c0_0 = arith.constant 0 : index
    %0 = vector.load %arg1[%c0, %c0_0] : memref<8x2xf32, #tpu.memory_space<vmem>>, vector<8x2xf32>
    %c0_1 = arith.constant 0 : index
    %c0_2 = arith.constant 0 : index
    %1 = vector.load %arg2[%c0_1, %c0_2] : memref<2x32xf32, #tpu.memory_space<vmem>>, vector<2x32xf32>
    %2 = vector.extract_strided_slice %0 {offsets = [0, 0], sizes = [8, 1], strides = [1, 1]} : vector<8x2xf32> to vector<8x1xf32>
    %3 = vector.extract_strided_slice %1 {offsets = [0, 0], sizes = [1, 32], strides = [1, 1]} : vector<2x32xf32> to vector<1x32xf32>
    %4 = vector.broadcast %2 : vector<8x1xf32> to vector<8x32xf32>
    %5 = vector.broadcast %3 : vector<1x32xf32> to vector<8x32xf32>
    %6 = arith.mulf %4, %5 : vector<8x32xf32>
    %7 = vector.extract_strided_slice %0 {offsets = [0, 1], sizes = [8, 1], strides = [1, 1]} : vector<8x2xf32> to vector<8x1xf32>
    %8 = vector.extract_strided_slice %1 {offsets = [1, 0], sizes = [1, 32], strides = [1, 1]} : vector<2x32xf32> to vector<1x32xf32>
    %9 = vector.broadcast %7 : vector<8x1xf32> to vector<8x32xf32>
    %10 = vector.broadcast %8 : vector<1x32xf32> to vector<8x32xf32>
    %11 = arith.mulf %9, %10 : vector<8x32xf32>
    %12 = arith.addf %6, %11 : vector<8x32xf32>
    %c0_3 = arith.constant 0 : index
    %c0_4 = arith.constant 0 : index
    %13 = vector.load %arg3[%c0_3, %c0_4] : memref<1x32xf32, #tpu.memory_space<vmem>>, vector<1x32xf32>
    %14 = vector.broadcast %13 : vector<1x32xf32> to vector<8x32xf32>
    %15 = arith.addf %12, %14 : vector<8x32xf32>
    %cst = arith.constant 0.000000e+00 : f32
    %16 = vector.broadcast %cst : f32 to vector<8x32xf32>
    %17 = arith.maximumf %15, %16 : vector<8x32xf32>
    %c0_5 = arith.constant 0 : index
    %c0_6 = arith.constant 0 : index
    %18 = vector.load %arg4[%c0_5, %c0_6] : memref<32x2xf32, #tpu.memory_space<vmem>>, vector<32x2xf32>
    %cst_7 = arith.constant dense<0.000000e+00> : vector<8x2xf32>
    %19 = tpu.matmul %17, %18, %cst_7 {dimension_numbers = #tpu.dot_dimension_numbers<[1], [0], [0], [1], [0, 0, 1, 1], [], []>} : vector<8x32xf32>, vector<32x2xf32>, vector<8x2xf32> -> vector<8x2xf32>
    %c0_8 = arith.constant 0 : index
    %c0_9 = arith.constant 0 : index
    %20 = vector.load %arg5[%c0_8, %c0_9] : memref<1x2xf32, #tpu.memory_space<vmem>>, vector<1x2xf32>
    %21 = vector.broadcast %20 : vector<1x2xf32> to vector<8x2xf32>
    %22 = arith.addf %19, %21 : vector<8x2xf32>
    %c0_10 = arith.constant 0 : index
    %c0_11 = arith.constant 0 : index
    %23 = vector.load %arg6[%c0_10, %c0_11] : memref<8x2xf32, #tpu.memory_space<vmem>>, vector<8x2xf32>
    tpu.vector_store %arg6[%c0_10, %c0_11], %22 {strides = array<i32>} : memref<8x2xf32, #tpu.memory_space<vmem>>, vector<8x2xf32>,
    return
  }
  func.func @transform_0(%arg0: i32) -> (i32, i32) {
    %c0_i32 = arith.constant 0 : i32
    %c0_i32_0 = arith.constant 0 : i32
    return %arg0, %c0_i32 : i32, i32
  }
  func.func @transform_1(%arg0: i32) -> (i32, i32) {
    %c0_i32 = arith.constant 0 : i32
    %c0_i32_0 = arith.constant 0 : i32
    %c0_i32_1 = arith.constant 0 : i32
    return %c0_i32, %c0_i32_0 : i32, i32
  }
  func.func @transform_2(%arg0: i32) -> (i32, i32) {
    %c0_i32 = arith.constant 0 : i32
    %c0_i32_0 = arith.constant 0 : i32
    %c0_i32_1 = arith.constant 0 : i32
    return %c0_i32, %c0_i32_0 : i32, i32
  }
  func.func @transform_3(%arg0: i32) -> (i32, i32) {
    %c0_i32 = arith.constant 0 : i32
    %c0_i32_0 = arith.constant 0 : i32
    %c0_i32_1 = arith.constant 0 : i32
    return %c0_i32, %c0_i32_0 : i32, i32
  }
  func.func @transform_4(%arg0: i32) -> (i32, i32) {
    %c0_i32 = arith.constant 0 : i32
    %c0_i32_0 = arith.constant 0 : i32
    %c0_i32_1 = arith.constant 0 : i32
    return %c0_i32, %c0_i32_0 : i32, i32
  }
  func.func @transform_5(%arg0: i32) -> (i32, i32) {
    %c0_i32 = arith.constant 0 : i32
    %c0_i32_0 = arith.constant 0 : i32
    return %arg0, %c0_i32 : i32, i32
  }
}

</mosaic_0001>

<bundles_post_ra>
// kernel: tpu_custom_call.1
= control target key start
LH: loop header
LB: loop body
LE: loop exit
PB: predicated region body
PF: predicated region fallthrough
CT: control target
= control target key end

     0   :  { %s393_s18 = smov 0   ;;  %s438_s0 = inlined_call_operand.vmem [shape: f32[16,2], index: 0, kind: input, shape index: {}]   ;;  %s439_s1 = inlined_call_operand.vmem [shape: f32[2,32], index: 1, kind: input, shape index: {}]   ;;  %s440_s2 = inlined_call_operand.vmem [shape: f32[1,32], index: 2, kind: input, shape index: {}]   ;;  %s441_s3 = inlined_call_operand.vmem [shape: f32[32,2], index: 3, kind: input, shape index: {}]   ;;  %s442_s4 = inlined_call_operand.vmem [shape: f32[1,2], index: 4, kind: input, shape index: {}]   ;;  %s443_s5 = inlined_call_operand.vmem [shape: f32[16,2], index: 5, kind: output, shape index: {}]  }
   0x1 LB: > { %s329_s19 = sadd.s32 4294967295, %s359_s18   ;;  %p333_p0 = scmp.ge.s32.totalorder %s359_s18, 1  ;;  %s359_s18 = sphi %s393_s18, %s15_s18  }
   0x2   : > { %p186_p1 = scmp.lt.s32.totalorder %s359_s18, 3 }
   0x4   : > { %p187_p2 = pnand %p333_p0, %p186_p1 }
   0x5   : > { %p212_p3 = scmp.lt.s32.totalorder (!%p187_p2), %s329_s19, 1 }
   0x6   : > { %190 = sbr.rel (%p187_p2) target bundleno = 276 (0x114), region = 40 }
   0xb   : > { %v361_v0 = vmov 0   ;;  %s445_s19 = smov (!%p212_p3, %s329_s19), 1  ;;  %v362_v2 = vmov 1   ;;  %v245_v3 = vld [vmem:[%s441_s3 + $0x18] sm:$0xff]  ;;  %v244_v4 = vld [vmem:[%s441_s3 + $0x10] sm:$0xff]  ;;  %v243_v5 = vld [vmem:[%s441_s3 + $0x8] sm:$0xff] }
   0xc   : > { %349 = vset.pattern.permute.xlu0 %v361_v0  ;;  %s334_s20 = sshll.u32 %s445_s19, 3  ;;  %266 = vmatpush.msra.mxu0 %v245_v3  ;;  %v242_v6 = vld [vmem:[%s441_s3] sm:$0xff]  ;;  %vm250_vm0 = vcmask 261120   ;;  %vm274_vm1 = vcmask 15360  }
   0xd   : > { %s215_s23 = scalar_lea.vmem %s438_s0, %s334_s20  ;;  %v221_v8 = vld [vmem:[%s439_s1] sm:$0x3]  ;;  %s219_s15 = scalar_lea.vmem %s443_s5, %s334_s20 }
   0xe   : > { %v220_v1 = vld [vmem:[%s215_s23] sm:$0xff]  ;;  %267 = vmatpush.msra.mxu0 %v244_v4  ;;  %v227_v9 = vperm.slane %v221_v8, 0  ;;  %v233_v10 = vperm.slane %v221_v8, 1 }
   0xf   : > { %224 = vperm.xlu0 %349, %v220_v1   ;;  %v351_v14 = vld [vmem:[%s440_s2] ss:$0 sm:$0xff] }
  0x10   : > { %268 = vmatpush.msra.mxu0 %v243_v5  ;;  %v352_v18 = vld [vmem:[%s442_s4] ss:$0 sm:$0xff] }
  0x12   : > { %269 = vmatpush.msra.mxu0 %v242_v6 }
  0x17   : > { %350 = vset.pattern.permute.xlu0 %v362_v2 }
  0x18   : > { %230 = vperm.xlu0 %350, %v220_v1  }
  0x81   : > { %v225_v7 = vpop.permute.xlu0 %224 }
  0x82   : > { %v228_v12 = vmul.f32 %v227_v9, %v225_v7 }
  0x8a   : > { %v231_v11 = vpop.permute.xlu0 %230 }
  0x8b   : > { %v234_v13 = vmul.f32 %v233_v10, %v231_v11 }
  0x8d   : > { %v235_v15 = vadd.f32 %v234_v13, %v228_v12 }
  0x8f   : > { %v240_v16 = vadd.f32 %v351_v14, %v235_v15 }
  0x91   : > { %v241_v17 = vmax.f32 %v240_v16, 0.0 }
  0x93   : > { %336 = vmatmul.msk.f32.vlgmr.msra.gmra.mxu0 %vm250_vm0, %v241_v17 }
 0x110   : > { %v271_v19 = vpop.f32.mrf.mxu0 }
 0x111   : > { %v272_v20 = vadd.f32 %v352_v18, %v271_v19 }
 0x113   : > { %275 = vst.msk [vmem:[%s219_s15] sm:$0xff] %vm274_vm1, %v272_v20 }
 0x114 PF: > { %s15_s18 = sadd.s32 1, %s359_s18  }
 0x115   : > { %p12_p4 = scmp.ge.s32.totalorder %s15_s18, 4  }
 0x117   :  { %14 = sbr.rel (!%p12_p4) target bundleno = 1 (0x1), region = 70 }

</bundles_post_ra>
